<compile_context>
chip_gen: v6e
topology: v6e:2x2x1
jax: 0.10.0
libtpu: 0.0.40
codegen_flags: <defaults>
</compile_context>

<pallas_src>
import jax
import jax.numpy as jnp
from jax.experimental import pallas as pl
from jax.experimental.pallas import tpu as pltpu


def _round_up(x, m):
    return (x + m - 1) // m * m


def _dot_hi(a, b):
    # Full-f32 matmul for the setup-time parameter fold.
    return jnp.dot(a, b, precision=jax.lax.Precision.HIGHEST)


def _gemv_kernel(x_ref, w_ref, b_ref, o_ref):
    # x: (TILE_B, D), w: (1, D), b: (1, 1)  ->  o: (TILE_B, 1)
    x = x_ref[...]
    w = w_ref[...]
    # VPU multiply + XLU cross-lane reduce; kernel is HBM-stream bound, so the
    # MXU is not needed for a width-1 output.
    o_ref[...] = jnp.sum(x * w, axis=-1, keepdims=True) + b_ref[...]


def fold_params(params):
    """Fold the activation-free 5-layer affine chain into (1, D) weight + (1, 1) bias."""
    (w1, b1), (w2, b2), (w3, b3), (w4, b4), (w5, b5) = params
    w_full = _dot_hi(_dot_hi(_dot_hi(_dot_hi(w1, w2), w3), w4), w5)          # (D, 1)
    b_full = _dot_hi(_dot_hi(_dot_hi(_dot_hi(b1, w2) + b2, w3) + b3, w4) + b4, w5) + b5
    return w_full.T, b_full                                                  # (1, D), (1, 1)


def aesthetic_predictor(x, params, *, tile_b=512):
    """Inference forward.  x: (B, input_size) f32; params: 5 (W_in_out, b_1_out) pairs."""
    # TODO(synk): training-mode dropout masks are not implemented; the full
    # network fold below is only valid for inference (dropout == identity).
    B, d_in = x.shape
    w_row, b_full = fold_params(params)

    # ---- Batch tiling ----------------------------------------------------
    if B >= 256:
        # Multi-tile path: 128-aligned tiles, capped so the grid has >= 2
        # tiles (lets "parallel" shard batch tiles over v7x's two TCs).
        cap = max(128, (_round_up(B, 128) // 2) // 128 * 128)
        tb = max(128, (min(tile_b, cap) // 128) * 128)
        b_pad = _round_up(B, tb)
        if b_pad != B:
            x = jnp.pad(x, ((0, b_pad - B), (0, 0)))
    else:
        tb = B          # single full-extent tile: no padding, no alignment constraint
        b_pad = B
    grid = (b_pad // tb,)

    resident = lambda i: (0, 0)          # folded weight/bias: never re-DMA'd
    in_specs = [
        pl.BlockSpec((tb, d_in), lambda i: (i, 0)),   # x: streamed per batch tile
        pl.BlockSpec((1, d_in), resident),            # folded weight row
        pl.BlockSpec((1, 1), resident),               # folded scalar bias
    ]
    out_specs = pl.BlockSpec((tb, 1), lambda i: (i, 0))

    # VMEM: double-buffered x / out tiles + (double-buffered) resident weight.
    x_tile_bytes = 4 * tb * d_in
    vmem_need = 2 * (x_tile_bytes + 4 * tb) + 2 * (4 * d_in + 4)
    vmem_limit = int(min(max(4 * vmem_need, 16 << 20), 64 << 20))

    flops = 2 * b_pad * d_in
    bytes_accessed = 4 * (b_pad * d_in + b_pad + d_in + 1)

    out = pl.pallas_call(
        _gemv_kernel,
        out_shape=jax.ShapeDtypeStruct((b_pad, 1), jnp.float32),
        grid=grid,
        in_specs=in_specs,
        out_specs=out_specs,
        compiler_params=pltpu.CompilerParams(
            dimension_semantics=("parallel",),   # v7x: shard batch tiles over 2 TCs
            vmem_limit_bytes=vmem_limit,
        ),
        cost_estimate=pl.CostEstimate(
            flops=flops, transcendentals=0, bytes_accessed=bytes_accessed),
    )(x, w_row, b_full)

    return out[:B]


def make_params(key, input_size):
    """Deterministic init mimicking nn.Linear's uniform init.

    Weights returned transposed to (in, out); biases as (1, out).
    """
    dims = [input_size, 1024, 128, 64, 16, 1]
    params = []
    for i in range(len(dims) - 1):
        fan_in, fan_out = dims[i], dims[i + 1]
        key, kw, kb = jax.random.split(key, 3)
        bound = 1.0 / jnp.sqrt(jnp.float32(fan_in))
        w = jax.random.uniform(kw, (fan_in, fan_out), jnp.float32, -bound, bound)
        b = jax.random.uniform(kb, (1, fan_out), jnp.float32, -bound, bound)
        params.append((w, b))
    return params


def reference_forward(x, params):
    h = x
    for w, b in params:
        h = _dot_hi(h, w) + b
    return h


if __name__ == "__main__":
    INPUT_SIZE = 32   # small, consistent with the module's `input_size` arg
    BATCH = 8

    key = jax.random.PRNGKey(0)
    key, kx = jax.random.split(key)
    x = jax.random.normal(kx, (BATCH, INPUT_SIZE), jnp.float32)
    key, kp = jax.random.split(key)
    params = make_params(kp, INPUT_SIZE)

    out = jax.block_until_ready(aesthetic_predictor(x, params))
    ref = reference_forward(x, params)
    assert out.shape == (BATCH, 1), out.shape
    assert jnp.allclose(out, ref, atol=1e-4, rtol=1e-4), (out, ref)

    # Multi-tile grid + batch-padding path (>= 2 tiles, exercises the
    # "parallel" batch sharding and the padded-rows-discarded slice).
    key, kx2 = jax.random.split(key)
    x2 = jax.random.normal(kx2, (300, INPUT_SIZE), jnp.float32)
    out2 = jax.block_until_ready(aesthetic_predictor(x2, params))
    ref2 = reference_forward(x2, params)
    assert out2.shape == (300, 1), out2.shape
    assert jnp.allclose(out2, ref2, atol=1e-4, rtol=1e-4)

    # Re-verify the full-network fold at a more realistic input_size.
    key, kp3 = jax.random.split(key)
    params768 = make_params(kp3, 768)
    key, kx3 = jax.random.split(key)
    x3 = jax.random.normal(kx3, (64, 768), jnp.float32)
    out3 = jax.block_until_ready(aesthetic_predictor(x3, params768))
    ref3 = reference_forward(x3, params768)
    assert out3.shape == (64, 1), out3.shape
    assert jnp.allclose(out3, ref3, atol=1e-4, rtol=1e-4)

    print("KERNEL_OK")
</pallas_src>

<mosaic_0001>
module attributes {stable_mosaic.version = 11 : i64} {
  func.func @_gemv_kernel(%arg0: i32, %arg1: memref<8x32xf32, #tpu.memory_space<vmem>>, %arg2: memref<1x32xf32, #tpu.memory_space<vmem>>, %arg3: memref<1x1xf32, #tpu.memory_space<vmem>>, %arg4: memref<8x1xf32, #tpu.memory_space<vmem>>) attributes {dimension_semantics = [#tpu.dimension_semantics<parallel>], iteration_bounds = array<i64: 1>, scalar_prefetch = 0 : i64, scratch_operands = 0 : i64, tpu.core_type = #tpu.core_type<tc>, window_params = [{transform_indices = @transform_0, window_bounds = array<i64: 8, 32>}, {pipeline_mode = #tpu.pipeline_mode<synchronous>, transform_indices = @transform_1, window_bounds = array<i64: 1, 32>}, {pipeline_mode = #tpu.pipeline_mode<synchronous>, transform_indices = @transform_2, window_bounds = array<i64: 1, 1>}, {transform_indices = @transform_3, window_bounds = array<i64: 8, 1>}]} {
    %c0 = arith.constant 0 : index
    %c0_0 = arith.constant 0 : index
    %0 = vector.load %arg1[%c0, %c0_0] : memref<8x32xf32, #tpu.memory_space<vmem>>, vector<8x32xf32>
    %c0_1 = arith.constant 0 : index
    %c0_2 = arith.constant 0 : index
    %1 = vector.load %arg2[%c0_1, %c0_2] : memref<1x32xf32, #tpu.memory_space<vmem>>, vector<1x32xf32>
    %2 = vector.broadcast %1 : vector<1x32xf32> to vector<8x32xf32>
    %3 = arith.mulf %0, %2 : vector<8x32xf32>
    %cst = arith.constant dense<0.000000e+00> : vector<8xf32>
    %4 = vector.multi_reduction <add>, %3, %cst [1] : vector<8x32xf32> to vector<8xf32>
    %5 = vector.shape_cast %4 : vector<8xf32> to vector<8x1xf32>
    %c0_3 = arith.constant 0 : index
    %c0_4 = arith.constant 0 : index
    %6 = vector.load %arg3[%c0_3, %c0_4] : memref<1x1xf32, #tpu.memory_space<vmem>>, vector<1x1xf32>
    %7 = vector.broadcast %6 : vector<1x1xf32> to vector<8x1xf32>
    %8 = arith.addf %5, %7 : vector<8x1xf32>
    %c0_5 = arith.constant 0 : index
    %c0_6 = arith.constant 0 : index
    %9 = vector.load %arg4[%c0_5, %c0_6] : memref<8x1xf32, #tpu.memory_space<vmem>>, vector<8x1xf32>
    tpu.vector_store %arg4[%c0_5, %c0_6], %8 {strides = array<i32>} : memref<8x1xf32, #tpu.memory_space<vmem>>, vector<8x1xf32>,
    return
  }
  func.func @transform_0(%arg0: i32) -> (i32, i32) {
    %c0_i32 = arith.constant 0 : i32
    %c0_i32_0 = arith.constant 0 : i32
    return %arg0, %c0_i32 : i32, i32
  }
  func.func @transform_1(%arg0: i32) -> (i32, i32) {
    %c0_i32 = arith.constant 0 : i32
    %c0_i32_0 = arith.constant 0 : i32
    %c0_i32_1 = arith.constant 0 : i32
    return %c0_i32, %c0_i32_0 : i32, i32
  }
  func.func @transform_2(%arg0: i32) -> (i32, i32) {
    %c0_i32 = arith.constant 0 : i32
    %c0_i32_0 = arith.constant 0 : i32
    %c0_i32_1 = arith.constant 0 : i32
    return %c0_i32, %c0_i32_0 : i32, i32
  }
  func.func @transform_3(%arg0: i32) -> (i32, i32) {
    %c0_i32 = arith.constant 0 : i32
    %c0_i32_0 = arith.constant 0 : i32
    return %arg0, %c0_i32 : i32, i32
  }
}

</mosaic_0001>

<bundles_post_ra>
// kernel: tpu_custom_call.1
= control target key start
LH: loop header
LB: loop body
LE: loop exit
PB: predicated region body
PF: predicated region fallthrough
CT: control target
= control target key end

     0   :  { %s114_s0 = inlined_call_operand.hbm [shape: f32[8,32], index: 0, kind: input, shape index: {}]   ;;  %s115_s1 = inlined_call_operand.vmem [shape: f32[1,32], index: 1, kind: input, shape index: {}]   ;;  %s116_s2 = inlined_call_operand.<no memory space> [shape: f32[1,1], index: 2, kind: input, shape index: {}]   ;;  %s117_s3 = inlined_call_operand.vmem [shape: f32[8,1], index: 3, kind: output, shape index: {}]  }
   0x1   :  { %v8_v0 = vstv %s116_s2 }
   0x2   :  { %9 = vst [vmem:[#allocation2] sm:$0x1] %v8_v0 }
   0x3   :  { %10 = vsyncpa [#allocation4], 0  ;;  %s81_s14 = smov [#allocation3]  }
   0x4   :  { %s17_s15 = sshll.u32 %s81_s14, 4  ;;  %s18_s15 = int_to_ptr.vmem [resolvable:$true] %s17_s15 }
   0x5   :  { %s67_s16 = scalar_lea.vmem %s18_s15, 128  ;;  %p72_p1 = scmp.lt.s32.totalorder %s18_s15, %s18_s15 }
   0x6   :  { %p68_p0 = scmp.ne.s32.totalorder %s18_s15, %s67_s16  ;;  %p73_p2 = scmp.lt.s32.totalorder %s67_s16, %s67_s16 }
   0x8   :  { %p74_p3 = por %p73_p2, %p72_p1 }
   0xa   :  { %p75_p4 = pnand %p74_p3, %p68_p0 }
   0xc   :  { %78 = shalt.err (!%p75_p4)
}
   0xd   :  { %20 = dma.hbm_to_vmem [thread:$0]  %s114_s0, 128, %s18_s15, [#allocation4]  }
   0xe   :  { %79 = dma.done.wait [#allocation4], 128  }
   0xf   :  { %80 = vsyncadd [#allocation4], 4294967168  ;;  %v28_v1 = vld [vmem:[#allocation3] sm:$0xff]  ;;  %v56_v2 = vld [vmem:[%s115_s1] ss:$0 sm:$0xff]  ;;  %vm37_vm0 = vcmask 261120  }
  0x10   :  { %v36_v3 = vmul.f32 %v56_v2, %v28_v1  ;;  %v57_v5 = vld [vmem:[#allocation2] ss:$0 sm:$0xff]  ;;  %vm49_vm1 = vcmask 7168  }
  0x12   :  { %v38_v4 = vsel %vm37_vm0, %v36_v3, 0.0 }
  0x13   :  { %39 = vadd.xlane.f32.xlu0 %v38_v4 }
  0x9c   :  { %v40_v6 = vpop.xlane.xlu0 %39 }
  0x9d   :  { %v48_v7 = vadd.f32 %v57_v5, %v40_v6 }
  0x9f   :  { %50 = vst.msk [vmem:[%s117_s3] sm:$0xff] %vm49_vm1, %v48_v7 }
  0xa0   :  { %55 = vsyncpa [#allocation4], 1 }

</bundles_post_ra>
